<compile_context>
chip_gen: v7x
topology: tpu7x:2x2x1
jax: 0.10.0
libtpu: 0.0.40
codegen_flags: <defaults>
</compile_context>

<pallas_src>
import jax
import jax.numpy as jnp
from jax.experimental import pallas as pl
from jax.experimental.pallas import tpu as pltpu

HID = 256    # padded from 200 (torch nn.Linear(input_dim, 200))
HID2 = 512   # padded from 400 (torch nn.Linear(400, 400)); == 2 * HID


def planner_kernel(x_ref, xp_ref,
                   w1_ref, b1_ref,
                   w2_ref, b2_ref,
                   wh1_ref, wh2_ref, bh_ref,
                   wa_ref, ba_ref,
                   out_ref):
    # bf16 matmul inputs, f32 accumulation, f32 elementwise.
    x = x_ref[...].astype(jnp.bfloat16)
    xp = xp_ref[...].astype(jnp.bfloat16)

    # fc / fc_ branches + ReLU
    h1 = jnp.maximum(
        jnp.dot(x, w1_ref[...], preferred_element_type=jnp.float32) + b1_ref[...], 0.0)
    h2 = jnp.maximum(
        jnp.dot(xp, w2_ref[...], preferred_element_type=jnp.float32) + b2_ref[...], 0.0)

    # hidden layer on concat([h1, h2], -1)  ==  h1 @ Wh[:HID] + h2 @ Wh[HID:]
    h = jnp.maximum(
        jnp.dot(h1.astype(jnp.bfloat16), wh1_ref[...],
                preferred_element_type=jnp.float32)
        + jnp.dot(h2.astype(jnp.bfloat16), wh2_ref[...],
                  preferred_element_type=jnp.float32)
        + bh_ref[...], 0.0)

    # action head + softmax over the last dim
    logits = (jnp.dot(h.astype(jnp.bfloat16), wa_ref[...],
                      preferred_element_type=jnp.float32) + ba_ref[...])
    m = jnp.max(logits, axis=-1, keepdims=True)
    e = jnp.exp(logits - m)
    out_ref[...] = e / jnp.sum(e, axis=-1, keepdims=True)


def planner_forward(x, x_, params, *, batch_block=128):
    (w1, b1, w2, b2, wh1, wh2, bh, wa, ba) = params
    B = x.shape[0]
    cat_dim = wa.shape[1]
    args = (x, x_, w1, b1, w2, b2, wh1, wh2, bh, wa, ba)
    out_shape = jax.ShapeDtypeStruct((B, cat_dim), jnp.float32)

    if B > batch_block and B % batch_block == 0:
        # Large batch: stream activation rows through a 1-D grid; weights are
        # mapped to the same block every step (stay resident in VMEM).
        def act_spec(a):
            return pl.BlockSpec((batch_block,) + a.shape[1:],
                                lambda i, nd=a.ndim: (i,) + (0,) * (nd - 1))

        def const_spec(a):
            return pl.BlockSpec(a.shape, lambda i, nd=a.ndim: (0,) * nd)

        in_specs = [act_spec(x), act_spec(x_)] + [const_spec(p) for p in params[:]]
        out_specs = pl.BlockSpec((batch_block, cat_dim), lambda i: (i, 0))
        return pl.pallas_call(
            planner_kernel,
            out_shape=out_shape,
            grid=(B // batch_block,),
            in_specs=in_specs,
            out_specs=out_specs,
            compiler_params=pltpu.CompilerParams(
                dimension_semantics=("parallel",)),  # v7x: split rows across TCs
        )(*args)

    # Small batch: no grid at all -> no pipeline prologue/epilogue, no
    # double-buffering; everything lives in VMEM for the single invocation.
    vmem = pltpu.MemorySpace.VMEM
    return pl.pallas_call(
        planner_kernel,
        out_shape=out_shape,
        in_specs=[pl.BlockSpec(memory_space=vmem) for _ in args],
        out_specs=pl.BlockSpec(memory_space=vmem),
    )(*args)


def init_params(key, input_dim, categorical_dim):
    """Returns (kernel_params, logical_params).

    logical_params are the un-padded f32 torch-equivalent weights (for the
    reference); kernel_params are bf16, [in, out]-layout, zero-padded to
    lane-aligned hidden sizes (200->256, 400->512).
    """
    ks = jax.random.split(key, 8)
    s_in = float(input_dim) ** -0.5
    s_400 = 400.0 ** -0.5

    def u(k, shape, s):
        return jax.random.uniform(k, shape, jnp.float32, -s, s)

    w1 = u(ks[0], (input_dim, 200), s_in)
    b1 = u(ks[1], (1, 200), s_in)
    w2 = u(ks[2], (input_dim, 200), s_in)
    b2 = u(ks[3], (1, 200), s_in)
    wh = u(ks[4], (400, 400), s_400)
    bh = u(ks[5], (1, 400), s_400)
    wa = u(ks[6], (400, categorical_dim), s_400)
    ba = u(ks[7], (1, categorical_dim), s_400)
    logical = (w1, b1, w2, b2, wh, bh, wa, ba)

    def pad_to(a, shape, dtype):
        out = jnp.zeros(shape, dtype)
        return out.at[: a.shape[0], : a.shape[1]].set(a.astype(dtype))

    w1p = pad_to(w1, (input_dim, HID), jnp.bfloat16)
    b1p = pad_to(b1, (1, HID), jnp.float32)
    w2p = pad_to(w2, (input_dim, HID), jnp.bfloat16)
    b2p = pad_to(b2, (1, HID), jnp.float32)
    # split the hidden weight so concat([h1,h2]) @ Wh == h1 @ Wh1 + h2 @ Wh2
    wh1p = pad_to(wh[:200, :], (HID, HID2), jnp.bfloat16)
    wh2p = pad_to(wh[200:, :], (HID, HID2), jnp.bfloat16)
    bhp = pad_to(bh, (1, HID2), jnp.float32)
    wap = pad_to(wa, (HID2, categorical_dim), jnp.bfloat16)
    bap = ba.astype(jnp.float32)

    kernel_params = (w1p, b1p, w2p, b2p, wh1p, wh2p, bhp, wap, bap)
    return kernel_params, logical


def planner_reference(x, x_, logical):
    (w1, b1, w2, b2, wh, bh, wa, ba) = logical
    h1 = jax.nn.relu(x @ w1 + b1)
    h2 = jax.nn.relu(x_ @ w2 + b2)
    cat = jnp.concatenate([h1, h2], axis=-1)
    h = jax.nn.relu(cat @ wh + bh)
    logits = h @ wa + ba
    return jax.nn.softmax(logits, axis=-1)


if __name__ == "__main__":
    input_dim = 32
    categorical_dim = 8

    key = jax.random.PRNGKey(0)
    kx, kx_, kp, kbx, kbx_ = jax.random.split(key, 5)
    kernel_params, logical = init_params(kp, input_dim, categorical_dim)

    # --- small-batch path (no grid, everything VMEM-resident) ---
    B = 8
    x = jax.random.normal(kx, (B, input_dim), jnp.float32)
    x_ = jax.random.normal(kx_, (B, input_dim), jnp.float32)
    out = jax.block_until_ready(planner_forward(x, x_, kernel_params))
    ref = planner_reference(x, x_, logical)
    assert out.shape == (B, categorical_dim)
    assert jnp.allclose(jnp.sum(out, axis=-1), 1.0, atol=1e-4), "softmax not normalized"
    assert jnp.allclose(out, ref, atol=2e-2, rtol=0.0), \
        f"small-batch mismatch: {float(jnp.max(jnp.abs(out - ref)))}"

    # --- batched path (grid over rows, weights resident, parallel across TCs) ---
    Bb = 512
    xb = jax.random.normal(kbx, (Bb, input_dim), jnp.float32)
    xb_ = jax.random.normal(kbx_, (Bb, input_dim), jnp.float32)
    outb = jax.block_until_ready(
        planner_forward(xb, xb_, kernel_params, batch_block=128))
    refb = planner_reference(xb, xb_, logical)
    assert outb.shape == (Bb, categorical_dim)
    assert jnp.allclose(jnp.sum(outb, axis=-1), 1.0, atol=1e-4), "softmax not normalized"
    assert jnp.allclose(outb, refb, atol=2e-2, rtol=0.0), \
        f"batched mismatch: {float(jnp.max(jnp.abs(outb - refb)))}"

    print("KERNEL_OK")
</pallas_src>

<mosaic_0001>
module attributes {stable_mosaic.version = 11 : i64} {
  func.func @planner_kernel(%arg0: memref<8x32xf32, #tpu.memory_space<vmem>>, %arg1: memref<8x32xf32, #tpu.memory_space<vmem>>, %arg2: memref<32x256xbf16, #tpu.memory_space<vmem>>, %arg3: memref<1x256xf32, #tpu.memory_space<vmem>>, %arg4: memref<32x256xbf16, #tpu.memory_space<vmem>>, %arg5: memref<1x256xf32, #tpu.memory_space<vmem>>, %arg6: memref<256x512xbf16, #tpu.memory_space<vmem>>, %arg7: memref<256x512xbf16, #tpu.memory_space<vmem>>, %arg8: memref<1x512xf32, #tpu.memory_space<vmem>>, %arg9: memref<512x8xbf16, #tpu.memory_space<vmem>>, %arg10: memref<1x8xf32, #tpu.memory_space<vmem>>, %arg11: memref<8x8xf32, #tpu.memory_space<vmem>>) attributes {dimension_semantics = [], scalar_prefetch = 0 : i64, scratch_operands = 0 : i64, tpu.core_type = #tpu.core_type<tc>} {
    %c0 = arith.constant 0 : index
    %c0_0 = arith.constant 0 : index
    %0 = vector.load %arg0[%c0, %c0_0] : memref<8x32xf32, #tpu.memory_space<vmem>>, vector<8x32xf32>
    %1 = arith.truncf %0 : vector<8x32xf32> to vector<8x32xbf16>
    %c0_1 = arith.constant 0 : index
    %c0_2 = arith.constant 0 : index
    %2 = vector.load %arg1[%c0_1, %c0_2] : memref<8x32xf32, #tpu.memory_space<vmem>>, vector<8x32xf32>
    %3 = arith.truncf %2 : vector<8x32xf32> to vector<8x32xbf16>
    %c0_3 = arith.constant 0 : index
    %c0_4 = arith.constant 0 : index
    %4 = vector.load %arg2[%c0_3, %c0_4] : memref<32x256xbf16, #tpu.memory_space<vmem>>, vector<32x256xbf16>
    %cst = arith.constant dense<0.000000e+00> : vector<8x256xf32>
    %5 = tpu.matmul %1, %4, %cst {dimension_numbers = #tpu.dot_dimension_numbers<[1], [0], [0], [1], [0, 0, 1, 1], [], []>} : vector<8x32xbf16>, vector<32x256xbf16>, vector<8x256xf32> -> vector<8x256xf32>
    %c0_5 = arith.constant 0 : index
    %c0_6 = arith.constant 0 : index
    %6 = vector.load %arg3[%c0_5, %c0_6] : memref<1x256xf32, #tpu.memory_space<vmem>>, vector<1x256xf32>
    %7 = vector.broadcast %6 : vector<1x256xf32> to vector<8x256xf32>
    %8 = arith.addf %5, %7 : vector<8x256xf32>
    %cst_7 = arith.constant 0.000000e+00 : f32
    %9 = vector.broadcast %cst_7 : f32 to vector<8x256xf32>
    %10 = arith.maximumf %8, %9 : vector<8x256xf32>
    %c0_8 = arith.constant 0 : index
    %c0_9 = arith.constant 0 : index
    %11 = vector.load %arg4[%c0_8, %c0_9] : memref<32x256xbf16, #tpu.memory_space<vmem>>, vector<32x256xbf16>
    %cst_10 = arith.constant dense<0.000000e+00> : vector<8x256xf32>
    %12 = tpu.matmul %3, %11, %cst_10 {dimension_numbers = #tpu.dot_dimension_numbers<[1], [0], [0], [1], [0, 0, 1, 1], [], []>} : vector<8x32xbf16>, vector<32x256xbf16>, vector<8x256xf32> -> vector<8x256xf32>
    %c0_11 = arith.constant 0 : index
    %c0_12 = arith.constant 0 : index
    %13 = vector.load %arg5[%c0_11, %c0_12] : memref<1x256xf32, #tpu.memory_space<vmem>>, vector<1x256xf32>
    %14 = vector.broadcast %13 : vector<1x256xf32> to vector<8x256xf32>
    %15 = arith.addf %12, %14 : vector<8x256xf32>
    %cst_13 = arith.constant 0.000000e+00 : f32
    %16 = vector.broadcast %cst_13 : f32 to vector<8x256xf32>
    %17 = arith.maximumf %15, %16 : vector<8x256xf32>
    %18 = arith.truncf %10 : vector<8x256xf32> to vector<8x256xbf16>
    %c0_14 = arith.constant 0 : index
    %c0_15 = arith.constant 0 : index
    %19 = vector.load %arg6[%c0_14, %c0_15] : memref<256x512xbf16, #tpu.memory_space<vmem>>, vector<256x512xbf16>
    %cst_16 = arith.constant dense<0.000000e+00> : vector<8x512xf32>
    %20 = tpu.matmul %18, %19, %cst_16 {dimension_numbers = #tpu.dot_dimension_numbers<[1], [0], [0], [1], [0, 0, 1, 1], [], []>} : vector<8x256xbf16>, vector<256x512xbf16>, vector<8x512xf32> -> vector<8x512xf32>
    %21 = arith.truncf %17 : vector<8x256xf32> to vector<8x256xbf16>
    %c0_17 = arith.constant 0 : index
    %c0_18 = arith.constant 0 : index
    %22 = vector.load %arg7[%c0_17, %c0_18] : memref<256x512xbf16, #tpu.memory_space<vmem>>, vector<256x512xbf16>
    %cst_19 = arith.constant dense<0.000000e+00> : vector<8x512xf32>
    %23 = tpu.matmul %21, %22, %cst_19 {dimension_numbers = #tpu.dot_dimension_numbers<[1], [0], [0], [1], [0, 0, 1, 1], [], []>} : vector<8x256xbf16>, vector<256x512xbf16>, vector<8x512xf32> -> vector<8x512xf32>
    %24 = arith.addf %20, %23 : vector<8x512xf32>
    %c0_20 = arith.constant 0 : index
    %c0_21 = arith.constant 0 : index
    %25 = vector.load %arg8[%c0_20, %c0_21] : memref<1x512xf32, #tpu.memory_space<vmem>>, vector<1x512xf32>
    %26 = vector.broadcast %25 : vector<1x512xf32> to vector<8x512xf32>
    %27 = arith.addf %24, %26 : vector<8x512xf32>
    %cst_22 = arith.constant 0.000000e+00 : f32
    %28 = vector.broadcast %cst_22 : f32 to vector<8x512xf32>
    %29 = arith.maximumf %27, %28 : vector<8x512xf32>
    %30 = arith.truncf %29 : vector<8x512xf32> to vector<8x512xbf16>
    %c0_23 = arith.constant 0 : index
    %c0_24 = arith.constant 0 : index
    %31 = vector.load %arg9[%c0_23, %c0_24] : memref<512x8xbf16, #tpu.memory_space<vmem>>, vector<512x8xbf16>
    %cst_25 = arith.constant dense<0.000000e+00> : vector<8x8xf32>
    %32 = tpu.matmul %30, %31, %cst_25 {dimension_numbers = #tpu.dot_dimension_numbers<[1], [0], [0], [1], [0, 0, 1, 1], [], []>} : vector<8x512xbf16>, vector<512x8xbf16>, vector<8x8xf32> -> vector<8x8xf32>
    %c0_26 = arith.constant 0 : index
    %c0_27 = arith.constant 0 : index
    %33 = vector.load %arg10[%c0_26, %c0_27] : memref<1x8xf32, #tpu.memory_space<vmem>>, vector<1x8xf32>
    %34 = vector.broadcast %33 : vector<1x8xf32> to vector<8x8xf32>
    %35 = arith.addf %32, %34 : vector<8x8xf32>
    %cst_28 = arith.constant dense<0xFF800000> : vector<8xf32>
    %36 = vector.multi_reduction <maximumf>, %35, %cst_28 [1] : vector<8x8xf32> to vector<8xf32>
    %37 = vector.shape_cast %36 : vector<8xf32> to vector<8x1xf32>
    %38 = vector.broadcast %37 : vector<8x1xf32> to vector<8x8xf32>
    %39 = arith.subf %35, %38 : vector<8x8xf32>
    %40 = math.exp %39 : vector<8x8xf32>
    %cst_29 = arith.constant dense<0.000000e+00> : vector<8xf32>
    %41 = vector.multi_reduction <add>, %40, %cst_29 [1] : vector<8x8xf32> to vector<8xf32>
    %42 = vector.shape_cast %41 : vector<8xf32> to vector<8x1xf32>
    %43 = vector.broadcast %42 : vector<8x1xf32> to vector<8x8xf32>
    %44 = arith.divf %40, %43 : vector<8x8xf32>
    %c0_30 = arith.constant 0 : index
    %c0_31 = arith.constant 0 : index
    %45 = vector.load %arg11[%c0_30, %c0_31] : memref<8x8xf32, #tpu.memory_space<vmem>>, vector<8x8xf32>
    tpu.vector_store %arg11[%c0_30, %c0_31], %44 {strides = array<i32>} : memref<8x8xf32, #tpu.memory_space<vmem>>, vector<8x8xf32>,
    return
  }
}

</mosaic_0001>

<bundles_post_ra>
// kernel: tpu_custom_call.1
= control target key start
LH: loop header
LB: loop body
LE: loop exit
PB: predicated region body
PF: predicated region fallthrough
CT: control target
= control target key end

     0   :  { %16 = vsyncpa [#allocation3], 0  ;;  %s2378_s0 = inlined_call_operand.vmem [shape: f32[8,32], index: 0, kind: input, shape index: {}]   ;;  %s2379_s1 = inlined_call_operand.vmem [shape: f32[8,32], index: 1, kind: input, shape index: {}]   ;;  %s2380_s2 = inlined_call_operand.vmem [shape: bf16[32,256], index: 2, kind: input, shape index: {}]   ;;  %s2381_s3 = inlined_call_operand.vmem [shape: f32[1,256], index: 3, kind: input, shape index: {}]   ;;  %s2382_s4 = inlined_call_operand.vmem [shape: bf16[32,256], index: 4, kind: input, shape index: {}]   ;;  %s2383_s5 = inlined_call_operand.vmem [shape: f32[1,256], index: 5, kind: input, shape index: {}]   ;;  %s2384_s6 = inlined_call_operand.hbm [shape: bf16[256,512], index: 6, kind: input, shape index: {}]   ;;  %s2385_s7 = inlined_call_operand.hbm [shape: bf16[256,512], index: 7, kind: input, shape index: {}]   ;;  %s2386_s8 = inlined_call_operand.vmem [shape: f32[1,512], index: 8, kind: input, shape index: {}]   ;;  %s2387_s9 = inlined_call_operand.vmem [shape: bf16[512,8], index: 9, kind: input, shape index: {}]   ;;  %s2388_s10 = inlined_call_operand.vmem [shape: f32[1,8], index: 10, kind: input, shape index: {}]   ;;  %s2389_s11 = inlined_call_operand.hbm [shape: f32[8,8], index: 11, kind: output, shape index: {}]  }
   0x1   :  { %17 = vsyncpa [#allocation6], 0 }
   0x2   :  { %18 = vsyncpa [#allocation4], 0  ;;  %s2112_s17 = smov [#allocation2]   ;;  %s2040_s21 = scalar_lea.hbm %s2384_s6, 8192 }
   0x3   :  { %s36_s18 = sshll.u32 %s2112_s17, 4  ;;  %p2041_p0 = scmp.ne.s32.totalorder %s2384_s6, %s2040_s21  ;;  %s37_s18 = int_to_ptr.vmem [resolvable:$true] %s36_s18 }
   0x4   :  { %p2044_p1 = scmp.lt.u32.totalorder %s2040_s21, %s2384_s6 }
   0x6   :  { %p2046_p2 = pnand %p2044_p1, %p2041_p0 }
   0x8   :  { %2049 = shalt.err (!%p2046_p2)
}
   0x9   :  { %s2050_s26 = scalar_lea.vmem %s37_s18, 8192  ;;  %p2055_p4 = scmp.lt.s32.totalorder %s37_s18, %s37_s18 }
   0xa   :  { %p2051_p3 = scmp.ne.s32.totalorder %s37_s18, %s2050_s26  ;;  %p2056_p5 = scmp.lt.s32.totalorder %s2050_s26, %s2050_s26 }
   0xc   :  { %p2057_p6 = por %p2056_p5, %p2055_p4 }
   0xe   :  { %p2058_p7 = pnand %p2057_p6, %p2051_p3 }
  0x10   :  { %2061 = shalt.err (!%p2058_p7)
}
  0x11   :  { %s2113_s27 = smov 256   ;;  %s2114_s28 = smov 16  }
  0x12   :  { %42 = dma.hbm_to_vmem [thread:$0]  %s2384_s6, 8192, %s37_s18, [#allocation3], %s2113_s27, %s2113_s27, %s2114_s28  }
  0x13   :  { %s2115_s12 = smov [#allocation5]   ;;  %s2062_s16 = scalar_lea.hbm %s2385_s7, 8192 }
  0x14   :  { %s48_s13 = sshll.u32 %s2115_s12, 4  ;;  %p2063_p8 = scmp.ne.s32.totalorder %s2385_s7, %s2062_s16  ;;  %s49_s13 = int_to_ptr.vmem [resolvable:$true] %s48_s13 }
  0x15   :  { %p2066_p9 = scmp.lt.u32.totalorder %s2062_s16, %s2385_s7 }
  0x17   :  { %p2068_p10 = pnand %p2066_p9, %p2063_p8 }
  0x19   :  { %2071 = shalt.err (!%p2068_p10)
}
  0x1a   :  { %s2072_s22 = scalar_lea.vmem %s49_s13, 8192  ;;  %p2077_p12 = scmp.lt.s32.totalorder %s49_s13, %s49_s13 }
  0x1b   :  { %p2073_p11 = scmp.ne.s32.totalorder %s49_s13, %s2072_s22  ;;  %p2078_p13 = scmp.lt.s32.totalorder %s2072_s22, %s2072_s22 }
  0x1d   :  { %p2079_p0 = por %p2078_p13, %p2077_p12 }
  0x1f   :  { %p2080_p1 = pnand %p2079_p0, %p2073_p11 }
  0x21   :  { %2083 = shalt.err (!%p2080_p1)
}
  0x22   :  { %54 = dma.hbm_to_vmem [thread:$0]  %s2385_s7, 8192, %s49_s13, [#allocation6], %s2113_s27, %s2113_s27, %s2114_s28  }
  0x23   :  { %2106 = dma.done.wait [#allocation3], 8192  }
  0x24   :  { %2107 = vsyncadd [#allocation3], 4294959104 }
  0x25   :  { %2108 = dma.done.wait [#allocation6], 8192  }
  0x26   :  { %2109 = vsyncadd [#allocation6], 4294959104  ;;  %v2116_v0 = vmov 0   ;;  %v1800_v1 = vld [vmem:[%s2382_s4 + $0x4] ss:$8 sps:$4 sm:$0xff]   ;;  %vm108_vm0 = vcmask 261120  }
  0x27   :  { %226 = vmatprep.mubr.bf16.mxu1 %v2116_v0  ;;  %144 = vmatprep.mubr.bf16.mxu0 %v2116_v0  ;;  %v1802_v2 = vld [vmem:[%s2382_s4] ss:$8 sps:$4 sm:$0xff]   ;;  %v1803_v3 = vld [vmem:[%s2382_s4 + $0x14] ss:$8 sps:$4 sm:$0xff]   ;;  %v1805_v4 = vld [vmem:[%s2382_s4 + $0x10] ss:$8 sps:$4 sm:$0xff]  }
  0x28   :  { %194 = vmatprep.subr.bf16.mxu1 %v1800_v1  ;;  %v70_v5 = vld [vmem:[%s2379_s1] sm:$0xff]  ;;  %v1809_v8 = vld [vmem:[%s2380_s2 + $0x14] ss:$8 sps:$4 sm:$0xff]   ;;  %v1811_v9 = vld [vmem:[%s2380_s2 + $0x10] ss:$8 sps:$4 sm:$0xff]   ;;  %vm1550_vm1 = vcmask 64512  }
  0x29   :  { %195 = vmatpush1.bf16.msra.mxu1 %v1802_v2  ;;  %v1806_v6 = vld [vmem:[%s2380_s2 + $0x4] ss:$8 sps:$4 sm:$0xff]   ;;  %v1808_v7 = vld [vmem:[%s2380_s2] ss:$8 sps:$4 sm:$0xff]   ;;  %v71_v10 = vpack.c.bf16 %v70_v5, %v70_v5 }
  0x2a   :  { %196 = vmatprep.subr.bf16.mxu1 %v1803_v3  ;;  %112 = vmatprep.subr.bf16.mxu0 %v1806_v6  ;;  %v68_v11 = vld [vmem:[%s2378_s0] sm:$0xff]  ;;  %v1815_v13 = vld [vmem:[#allocation5 + $0x8] ss:$16 sps:$4 sm:$0xff]   ;;  %v1817_v14 = vld [vmem:[#allocation5 + $0xc] ss:$16 sps:$4 sm:$0xff]  }
  0x2b   :  { %113 = vmatpush1.bf16.msra.mxu0 %v1808_v7  ;;  %v1814_v12 = vld [vmem:[#allocation5 + $0x4] ss:$16 sps:$4 sm:$0xff]   ;;  %v69_v15 = vpack.c.bf16 %v68_v11, %v68_v11  ;;  %v1812_v16 = vld [vmem:[#allocation5] ss:$16 sps:$4 sm:$0xff]   ;;  %v1823_v18 = vld [vmem:[#allocation5 + $0x2c] ss:$16 sps:$4 sm:$0xff]  }
  0x2c   :  { %114 = vmatprep.subr.bf16.mxu0 %v1809_v8  ;;  %v1820_v17 = vld [vmem:[#allocation5 + $0x24] ss:$16 sps:$4 sm:$0xff]   ;;  %v1821_v19 = vld [vmem:[#allocation5 + $0x28] ss:$16 sps:$4 sm:$0xff]   ;;  %v1829_v20 = vld [vmem:[#allocation5 + $0x4c] ss:$16 sps:$4 sm:$0xff]  }
  0x2d   :  { %197 = vmatpush1.bf16.msra.mxu1 %v1805_v4  ;;  %v1818_v21 = vld [vmem:[#allocation5 + $0x20] ss:$16 sps:$4 sm:$0xff]   ;;  %v1826_v22 = vld [vmem:[#allocation5 + $0x44] ss:$16 sps:$4 sm:$0xff]   ;;  %v1827_v23 = vld [vmem:[#allocation5 + $0x48] ss:$16 sps:$4 sm:$0xff]  }
  0x2e   :  { %730 = vmatprep.subr.bf16.mxu1 %v1817_v14  ;;  %v1835_v24 = vld [vmem:[#allocation5 + $0x6c] ss:$16 sps:$4 sm:$0xff]   ;;  %v1824_v25 = vld [vmem:[#allocation5 + $0x40] ss:$16 sps:$4 sm:$0xff]   ;;  %v1832_v26 = vld [vmem:[#allocation5 + $0x64] ss:$16 sps:$4 sm:$0xff]  }
  0x2f   :  { %115 = vmatpush1.bf16.msra.mxu0 %v1811_v9  ;;  %v1833_v27 = vld [vmem:[#allocation5 + $0x68] ss:$16 sps:$4 sm:$0xff]   ;;  %v1841_v28 = vld [vmem:[#allocation5 + $0x8c] ss:$16 sps:$4 sm:$0xff]   ;;  %v1830_v29 = vld [vmem:[#allocation5 + $0x60] ss:$16 sps:$4 sm:$0xff]  }
  0x30   :  { %1588 = vmatmul.mubr.msk.bf16.vlgmr.msra.gmra.mrb[0].mxu1 %vm108_vm0, %v71_v10  ;;  %689 = vmatprep.subr.bf16.mxu0 %v1814_v12  ;;  %v1838_v30 = vld [vmem:[#allocation5 + $0x84] ss:$16 sps:$4 sm:$0xff]   ;;  %v1839_v31 = vld [vmem:[#allocation5 + $0x88] ss:$16 sps:$4 sm:$0xff]   ;;  %v1847_v32 = vld [vmem:[#allocation5 + $0xac] ss:$16 sps:$4 sm:$0xff]  }
  0x31   :  { %731 = vmatpush1.bf16.msra.mxu1 %v1815_v13  ;;  %v1836_v33 = vld [vmem:[#allocation5 + $0x80] ss:$16 sps:$4 sm:$0xff]   ;;  %v1844_v34 = vld [vmem:[#allocation5 + $0xa4] ss:$16 sps:$4 sm:$0xff]   ;;  %v1845_v35 = vld [vmem:[#allocation5 + $0xa8] ss:$16 sps:$4 sm:$0xff]  }
  0x32   :  { %1583 = vmatmul.mubr.msk.bf16.vlgmr.msra.gmra.mrb[0].mxu0 %vm108_vm0, %v69_v15  ;;  %732 = vmatprep.subr.bf16.mxu1 %v1823_v18  ;;  %v1853_v36 = vld [vmem:[#allocation5 + $0xcc] ss:$16 sps:$4 sm:$0xff]   ;;  %v1842_v37 = vld [vmem:[#allocation5 + $0xa0] ss:$16 sps:$4 sm:$0xff]   ;;  %v1850_v38 = vld [vmem:[#allocation5 + $0xc4] ss:$16 sps:$4 sm:$0xff]   ;;  %v78_v15 = vlaneseq }
  0x33   :  { %690 = vmatpush1.bf16.msra.mxu0 %v1812_v16  ;;  %v1851_v39 = vld [vmem:[#allocation5 + $0xc8] ss:$16 sps:$4 sm:$0xff]   ;;  %v1859_v40 = vld [vmem:[#allocation5 + $0xec] ss:$16 sps:$4 sm:$0xff]   ;;  %v1848_v41 = vld [vmem:[#allocation5 + $0xc0] ss:$16 sps:$4 sm:$0xff]  }
  0x34   :  { %691 = vmatprep.subr.bf16.mxu0 %v1820_v17  ;;  %v1856_v42 = vld [vmem:[#allocation5 + $0xe4] ss:$16 sps:$4 sm:$0xff]   ;;  %v1857_v43 = vld [vmem:[#allocation5 + $0xe8] ss:$16 sps:$4 sm:$0xff]   ;;  %v1865_v44 = vld [vmem:[#allocation5 + $0x10c] ss:$16 sps:$4 sm:$0xff]  }
  0x35   :  { %733 = vmatpush1.bf16.msra.mxu1 %v1821_v19  ;;  %v1854_v45 = vld [vmem:[#allocation5 + $0xe0] ss:$16 sps:$4 sm:$0xff]   ;;  %v1862_v46 = vld [vmem:[#allocation5 + $0x104] ss:$16 sps:$4 sm:$0xff]   ;;  %v1863_v47 = vld [vmem:[#allocation5 + $0x108] ss:$16 sps:$4 sm:$0xff]  }
  0x36   :  { %734 = vmatprep.subr.bf16.mxu1 %v1829_v20  ;;  %v1860_v48 = vld [vmem:[#allocation5 + $0x100] ss:$16 sps:$4 sm:$0xff]   ;;  %v1871_v49 = vld [vmem:[#allocation5 + $0x12c] ss:$16 sps:$4 sm:$0xff]   ;;  %v1868_v50 = vld [vmem:[#allocation5 + $0x124] ss:$16 sps:$4 sm:$0xff]  }
  0x37   :  { %692 = vmatpush1.bf16.msra.mxu0 %v1818_v21  ;;  %v1869_v51 = vld [vmem:[#allocation5 + $0x128] ss:$16 sps:$4 sm:$0xff]   ;;  %v1877_v52 = vld [vmem:[#allocation5 + $0x14c] ss:$16 sps:$4 sm:$0xff]   ;;  %v1866_v53 = vld [vmem:[#allocation5 + $0x120] ss:$16 sps:$4 sm:$0xff]  }
  0x38   :  { %693 = vmatprep.subr.bf16.mxu0 %v1826_v22  ;;  %v1874_v54 = vld [vmem:[#allocation5 + $0x144] ss:$16 sps:$4 sm:$0xff]   ;;  %v1875_v55 = vld [vmem:[#allocation5 + $0x148] ss:$16 sps:$4 sm:$0xff]   ;;  %v1883_v56 = vld [vmem:[#allocation5 + $0x16c] ss:$16 sps:$4 sm:$0xff]  }
  0x39   :  { %735 = vmatpush1.bf16.msra.mxu1 %v1827_v23  ;;  %v1872_v57 = vld [vmem:[#allocation5 + $0x140] ss:$16 sps:$4 sm:$0xff]   ;;  %v1880_v58 = vld [vmem:[#allocation5 + $0x164] ss:$16 sps:$4 sm:$0xff]   ;;  %v1881_v59 = vld [vmem:[#allocation5 + $0x168] ss:$16 sps:$4 sm:$0xff]  }
  0x3a   :  { %736 = vmatprep.subr.bf16.mxu1 %v1835_v24  ;;  %v1889_v60 = vld [vmem:[#allocation5 + $0x18c] ss:$16 sps:$4 sm:$0xff]   ;;  %v1878_v61 = vld [vmem:[#allocation5 + $0x160] ss:$16 sps:$4 sm:$0xff]   ;;  %v1886_v62 = vld [vmem:[#allocation5 + $0x184] ss:$16 sps:$4 sm:$0xff]  }
  0x3b   :  { %694 = vmatpush1.bf16.msra.mxu0 %v1824_v25  ;;  %v1887_v63 = vld [vmem:[#allocation5 + $0x188] ss:$16 sps:$4 sm:$0xff]   ;;  %v1895_v0 = vld [vmem:[#allocation5 + $0x1ac] ss:$16 sps:$4 sm:$0xff]   ;;  %v1884_v1 = vld [vmem:[#allocation5 + $0x180] ss:$16 sps:$4 sm:$0xff]  }
  0x3c   :  { %695 = vmatprep.subr.bf16.mxu0 %v1832_v26  ;;  %v1892_v2 = vld [vmem:[#allocation5 + $0x1a4] ss:$16 sps:$4 sm:$0xff]   ;;  %v1893_v3 = vld [vmem:[#allocation5 + $0x1a8] ss:$16 sps:$4 sm:$0xff]   ;;  %v1890_v4 = vld [vmem:[#allocation5 + $0x1a0] ss:$16 sps:$4 sm:$0xff]  }
  0x3d   :  { %737 = vmatpush1.bf16.msra.mxu1 %v1833_v27  ;;  %v1898_v5 = vld [vmem:[#allocation5 + $0x1c4] ss:$16 sps:$4 sm:$0xff]   ;;  %v1901_v6 = vld [vmem:[#allocation5 + $0x1cc] ss:$16 sps:$4 sm:$0xff]   ;;  %v1896_v7 = vld [vmem:[#allocation5 + $0x1c0] ss:$16 sps:$4 sm:$0xff]  }
  0x3e   :  { %738 = vmatprep.subr.bf16.mxu1 %v1841_v28  ;;  %v1899_v8 = vld [vmem:[#allocation5 + $0x1c8] ss:$16 sps:$4 sm:$0xff]   ;;  %v1904_v9 = vld [vmem:[#allocation5 + $0x1e4] ss:$16 sps:$4 sm:$0xff]   ;;  %v1907_v10 = vld [vmem:[#allocation5 + $0x1ec] ss:$16 sps:$4 sm:$0xff]  }
  0x3f   :  { %696 = vmatpush1.bf16.msra.mxu0 %v1830_v29  ;;  %v1902_v11 = vld [vmem:[#allocation5 + $0x1e0] ss:$16 sps:$4 sm:$0xff]   ;;  %v1905_v12 = vld [vmem:[#allocation5 + $0x1e8] ss:$16 sps:$4 sm:$0xff]   ;;  %v1910_v13 = vld [vmem:[#allocation2 + $0x4] ss:$16 sps:$4 sm:$0xff]  }
  0x40   :  { %697 = vmatprep.subr.bf16.mxu0 %v1838_v30  ;;  %v1913_v14 = vld [vmem:[#allocation2 + $0xc] ss:$16 sps:$4 sm:$0xff]   ;;  %v2232_v16 = vshrl.u32 %v78_v15, 7  ;;  %v159_v18 = vld [vmem:[%s2383_s5] sm:$0x3] }
  0x41   :  { %739 = vmatpush1.bf16.msra.mxu1 %v1839_v31  ;;  %v2248_v22 = vld [vmem:[%s2381_s3] sm:$0x3]  ;;  %v1970_v15 = vld [vmem:[#allocation2 + $0x144] ss:$16 sps:$4 sm:$0xff]  }
  0x42   :  { %740 = vmatprep.subr.bf16.mxu1 %v1847_v32  ;;  %v2235_v17 = vsub.s32 0, %v2232_v16  ;;  %v2241_v19 = vsub.s32 1, %v2232_v16 }
  0x43   :  { %698 = vmatpush1.bf16.msra.mxu0 %v1836_v33 }
  0x44   :  { %699 = vmatprep.subr.bf16.mxu0 %v1844_v34  ;;  %v164_v20 = vrot.slane %v159_v18, %v2235_v17  ;;  %v168_v21 = vrot.slane %v159_v18, %v2241_v19  ;;  %v85_v26 = vrot.slane %v2248_v22, %v2241_v19  ;;  %v1973_v18 = vld [vmem:[#allocation2 + $0x14c] ss:$16 sps:$4 sm:$0xff]  }
  0x45   :  { %741 = vmatpush1.bf16.msra.mxu1 %v1845_v35 }
  0x46   :  { %742 = vmatprep.subr.bf16.mxu1 %v1853_v36 }
  0x47   :  { %700 = vmatpush1.bf16.msra.mxu0 %v1842_v37  ;;  %v1908_v37 = vld [vmem:[#allocation2] ss:$16 sps:$4 sm:$0xff]  }
  0x48   :  { %701 = vmatprep.subr.bf16.mxu0 %v1850_v38  ;;  %v1911_v38 = vld [vmem:[#allocation2 + $0x8] ss:$16 sps:$4 sm:$0xff]  }
  0x49   :  { %743 = vmatpush1.bf16.msra.mxu1 %v1851_v39 }
  0x4a   :  { %744 = vmatprep.subr.bf16.mxu1 %v1859_v40 }
  0x4b   :  { %702 = vmatpush1.bf16.msra.mxu0 %v1848_v41  ;;  %v1916_v41 = vld [vmem:[#allocation2 + $0x24] ss:$16 sps:$4 sm:$0xff]  }
  0x4c   :  { %703 = vmatprep.subr.bf16.mxu0 %v1856_v42  ;;  %v1919_v42 = vld [vmem:[#allocation2 + $0x2c] ss:$16 sps:$4 sm:$0xff]  }
  0x4d   :  { %745 = vmatpush1.bf16.msra.mxu1 %v1857_v43 }
  0x4e   :  { %746 = vmatprep.subr.bf16.mxu1 %v1865_v44 }
  0x4f   :  { %704 = vmatpush1.bf16.msra.mxu0 %v1854_v45  ;;  %v1914_v45 = vld [vmem:[#allocation2 + $0x20] ss:$16 sps:$4 sm:$0xff]  }
  0x50   :  { %705 = vmatprep.subr.bf16.mxu0 %v1862_v46  ;;  %v1917_v46 = vld [vmem:[#allocation2 + $0x28] ss:$16 sps:$4 sm:$0xff]  }
  0x51   :  { %747 = vmatpush1.bf16.msra.mxu1 %v1863_v47  ;;  %v1922_v47 = vld [vmem:[#allocation2 + $0x44] ss:$16 sps:$4 sm:$0xff]  }
  0x52   :  { %748 = vmatprep.subr.bf16.mxu1 %v1871_v49  ;;  %v1920_v49 = vld [vmem:[#allocation2 + $0x40] ss:$16 sps:$4 sm:$0xff]  }
  0x53   :  { %706 = vmatpush1.bf16.msra.mxu0 %v1860_v48  ;;  %v1925_v48 = vld [vmem:[#allocation2 + $0x4c] ss:$16 sps:$4 sm:$0xff]  }
  0x54   :  { %707 = vmatprep.subr.bf16.mxu0 %v1868_v50  ;;  %v1923_v50 = vld [vmem:[#allocation2 + $0x48] ss:$16 sps:$4 sm:$0xff]  }
  0x55   :  { %749 = vmatpush1.bf16.msra.mxu1 %v1869_v51  ;;  %v1928_v51 = vld [vmem:[#allocation2 + $0x64] ss:$16 sps:$4 sm:$0xff]  }
  0x56   :  { %750 = vmatprep.subr.bf16.mxu1 %v1877_v52  ;;  %v1931_v52 = vld [vmem:[#allocation2 + $0x6c] ss:$16 sps:$4 sm:$0xff]  }
  0x57   :  { %708 = vmatpush1.bf16.msra.mxu0 %v1866_v53  ;;  %v1926_v53 = vld [vmem:[#allocation2 + $0x60] ss:$16 sps:$4 sm:$0xff]  }
  0x58   :  { %709 = vmatprep.subr.bf16.mxu0 %v1874_v54  ;;  %v1929_v54 = vld [vmem:[#allocation2 + $0x68] ss:$16 sps:$4 sm:$0xff]  }
  0x59   :  { %751 = vmatpush1.bf16.msra.mxu1 %v1875_v55  ;;  %v1934_v55 = vld [vmem:[#allocation2 + $0x84] ss:$16 sps:$4 sm:$0xff]  }
  0x5a   :  { %752 = vmatprep.subr.bf16.mxu1 %v1883_v56  ;;  %v1937_v56 = vld [vmem:[#allocation2 + $0x8c] ss:$16 sps:$4 sm:$0xff]  }
  0x5b   :  { %710 = vmatpush1.bf16.msra.mxu0 %v1872_v57  ;;  %v1932_v57 = vld [vmem:[#allocation2 + $0x80] ss:$16 sps:$4 sm:$0xff]  }
  0x5c   :  { %711 = vmatprep.subr.bf16.mxu0 %v1880_v58  ;;  %v1935_v58 = vld [vmem:[#allocation2 + $0x88] ss:$16 sps:$4 sm:$0xff]  }
  0x5d   :  { %753 = vmatpush1.bf16.msra.mxu1 %v1881_v59  ;;  %v1940_v59 = vld [vmem:[#allocation2 + $0xa4] ss:$16 sps:$4 sm:$0xff]  }
  0x5e   :  { %754 = vmatprep.subr.bf16.mxu1 %v1889_v60  ;;  %v1943_v60 = vld [vmem:[#allocation2 + $0xac] ss:$16 sps:$4 sm:$0xff]  }
  0x5f   :  { %712 = vmatpush1.bf16.msra.mxu0 %v1878_v61  ;;  %v1938_v61 = vld [vmem:[#allocation2 + $0xa0] ss:$16 sps:$4 sm:$0xff]  }
  0x60   :  { %713 = vmatprep.subr.bf16.mxu0 %v1886_v62  ;;  %v1941_v62 = vld [vmem:[#allocation2 + $0xa8] ss:$16 sps:$4 sm:$0xff]  }
  0x61   :  { %755 = vmatpush1.bf16.msra.mxu1 %v1887_v63  ;;  %v1946_v63 = vld [vmem:[#allocation2 + $0xc4] ss:$16 sps:$4 sm:$0xff]  }
  0x62   :  { %756 = vmatprep.subr.bf16.mxu1 %v1895_v0  ;;  %v1949_v0 = vld [vmem:[#allocation2 + $0xcc] ss:$16 sps:$4 sm:$0xff]  }
  0x63   :  { %714 = vmatpush1.bf16.msra.mxu0 %v1884_v1  ;;  %v1944_v1 = vld [vmem:[#allocation2 + $0xc0] ss:$16 sps:$4 sm:$0xff]  }
  0x64   :  { %715 = vmatprep.subr.bf16.mxu0 %v1892_v2  ;;  %v1947_v2 = vld [vmem:[#allocation2 + $0xc8] ss:$16 sps:$4 sm:$0xff]  }
  0x65   :  { %757 = vmatpush1.bf16.msra.mxu1 %v1893_v3  ;;  %v1952_v3 = vld [vmem:[#allocation2 + $0xe4] ss:$16 sps:$4 sm:$0xff]  }
  0x66   :  { %758 = vmatprep.subr.bf16.mxu1 %v1901_v6  ;;  %v1953_v6 = vld [vmem:[#allocation2 + $0xe8] ss:$16 sps:$4 sm:$0xff]  }
  0x67   :  { %716 = vmatpush1.bf16.msra.mxu0 %v1890_v4  ;;  %v1955_v4 = vld [vmem:[#allocation2 + $0xec] ss:$16 sps:$4 sm:$0xff]  }
  0x68   :  { %717 = vmatprep.subr.bf16.mxu0 %v1898_v5  ;;  %v1950_v5 = vld [vmem:[#allocation2 + $0xe0] ss:$16 sps:$4 sm:$0xff]  }
  0x69   :  { %759 = vmatpush1.bf16.msra.mxu1 %v1899_v8  ;;  %v1961_v8 = vld [vmem:[#allocation2 + $0x10c] ss:$16 sps:$4 sm:$0xff]  }
  0x6a   :  { %760 = vmatprep.subr.bf16.mxu1 %v1907_v10  ;;  %v1959_v10 = vld [vmem:[#allocation2 + $0x108] ss:$16 sps:$4 sm:$0xff]  }
  0x6b   :  { %718 = vmatpush1.bf16.msra.mxu0 %v1896_v7  ;;  %v1958_v7 = vld [vmem:[#allocation2 + $0x104] ss:$16 sps:$4 sm:$0xff]  }
  0x6c   :  { %719 = vmatprep.subr.bf16.mxu0 %v1904_v9  ;;  %v1956_v9 = vld [vmem:[#allocation2 + $0x100] ss:$16 sps:$4 sm:$0xff]  }
  0x6d   :  { %761 = vmatpush1.bf16.msra.mxu1 %v1905_v12  ;;  %v1967_v12 = vld [vmem:[#allocation2 + $0x12c] ss:$16 sps:$4 sm:$0xff]  }
  0x6e   :  { %1132 = vmatprep.subr.bf16.mxu1 %v1913_v14  ;;  %v1965_v14 = vld [vmem:[#allocation2 + $0x128] ss:$16 sps:$4 sm:$0xff]  }
  0x6f   :  { %720 = vmatpush1.bf16.msra.mxu0 %v1902_v11  ;;  %v1964_v11 = vld [vmem:[#allocation2 + $0x124] ss:$16 sps:$4 sm:$0xff]  }
  0x70   :  { %1091 = vmatprep.subr.bf16.mxu0 %v1910_v13  ;;  %v1962_v13 = vld [vmem:[#allocation2 + $0x120] ss:$16 sps:$4 sm:$0xff]  }
 0x103   :  { %v228_v23 = vpop.f32.mrb[0].mxu1 }
 0x104   :  { %v229_v24 = vadd.f32 %v228_v23, %v164_v20  ;;  %v230_v25 = vpop.f32.mrb[1].mxu1  ;;  %v1968_v20 = vld [vmem:[#allocation2 + $0x140] ss:$16 sps:$4 sm:$0xff]   ;;  %v1976_v23 = vld [vmem:[#allocation2 + $0x164] ss:$16 sps:$4 sm:$0xff]  }
 0x105   :  { %v231_v27 = vadd.f32 %v230_v25, %v168_v21  ;;  %v232_v28 = vpop.f32.mrb[2].mxu1  ;;  %v2252_v31 = vpop.f32.mrb[0].mxu0  ;;  %v1971_v21 = vld [vmem:[#allocation2 + $0x148] ss:$16 sps:$4 sm:$0xff]   ;;  %v1974_v25 = vld [vmem:[#allocation2 + $0x160] ss:$16 sps:$4 sm:$0xff]  }
 0x106   :  { %v235_v29 = vmax.f32 %v229_v24, 0.0  ;;  %v233_v30 = vpop.f32.mrb[3].mxu1  ;;  %v148_v33 = vpop.f32.mrb[1].mxu0  ;;  %v1979_v24 = vld [vmem:[#allocation2 + $0x16c] ss:$16 sps:$4 sm:$0xff]  }
 0x107   :  { %v236_v32 = vmax.f32 %v231_v27, 0.0  ;;  %v149_v34 = vadd.f32 %v148_v33, %v85_v26  ;;  %v150_v35 = vpop.f32.mrb[2].mxu0  ;;  %v1977_v26 = vld [vmem:[#allocation2 + $0x168] ss:$16 sps:$4 sm:$0xff]   ;;  %v1982_v27 = vld [vmem:[#allocation2 + $0x184] ss:$16 sps:$4 sm:$0xff]  }
 0x108   :  { %v151_v39 = vpop.f32.mrb[3].mxu0  ;;  %v303_v40 = vpack.c.bf16 %v235_v29, %v235_v29  ;;  %v1985_v28 = vld [vmem:[#allocation2 + $0x18c] ss:$16 sps:$4 sm:$0xff]   ;;  %v1980_v29 = vld [vmem:[#allocation2 + $0x180] ss:$16 sps:$4 sm:$0xff]  }
 0x109   :  { %v304_v36 = vpack.c.bf16 %v236_v32, %v236_v32  ;;  %v154_v43 = vmax.f32 %v149_v34, 0.0  ;;  %v1983_v30 = vld [vmem:[#allocation2 + $0x188] ss:$16 sps:$4 sm:$0xff]   ;;  %v1988_v32 = vld [vmem:[#allocation2 + $0x1a4] ss:$16 sps:$4 sm:$0xff]  }
 0x10a   :  { %v1991_v33 = vld [vmem:[#allocation2 + $0x1ac] ss:$16 sps:$4 sm:$0xff]   ;;  %v1986_v34 = vld [vmem:[#allocation2 + $0x1a0] ss:$16 sps:$4 sm:$0xff]   ;;  %v1989_v35 = vld [vmem:[#allocation2 + $0x1a8] ss:$16 sps:$4 sm:$0xff]  }
 0x10b   :  { %721 = vmatprep.mubr.bf16.mxu0 %v304_v36  ;;  %762 = vmatprep.mubr.bf16.mxu1 %v304_v36  ;;  %v238_v44 = vpack.c.bf16 %v154_v43, %v154_v43  ;;  %v81_v36 = vrot.slane %v2248_v22, %v2235_v17  ;;  %v1992_v39 = vld [vmem:[#allocation2 + $0x1c0] ss:$16 sps:$4 sm:$0xff]   ;;  %v2003_v43 = vld [vmem:[#allocation2 + $0x1ec] ss:$16 sps:$4 sm:$0xff]  }
 0x10c   :  { %722 = vmatmul.mubr.bf16.vlgmr.msra.gmra.mrb[4].mxu0 %v303_v40  ;;  %763 = vmatmul.mubr.bf16.vlgmr.msra.gmra.mrb[4].mxu1 %v303_v40  ;;  %v1995_v40 = vld [vmem:[#allocation2 + $0x1c8] ss:$16 sps:$4 sm:$0xff]  }
 0x10d   :  { %1092 = vmatpush1.bf16.msra.mxu0 %v1908_v37  ;;  %1133 = vmatpush1.bf16.msra.mxu1 %v1911_v38  ;;  %v1994_v37 = vld [vmem:[#allocation2 + $0x1c4] ss:$16 sps:$4 sm:$0xff]   ;;  %v1997_v38 = vld [vmem:[#allocation2 + $0x1cc] ss:$16 sps:$4 sm:$0xff]  }
 0x10e   :  { %1093 = vmatprep.subr.bf16.mxu0 %v1916_v41  ;;  %1134 = vmatprep.subr.bf16.mxu1 %v1919_v42  ;;  %v147_v41 = vadd.f32 %v2252_v31, %v81_v36  ;;  %v2000_v42 = vld [vmem:[#allocation2 + $0x1e4] ss:$16 sps:$4 sm:$0xff]  }
 0x10f   :  { %1123 = vmatprep.mubr.bf16.mxu0 %v238_v44  ;;  %1164 = vmatprep.mubr.bf16.mxu1 %v238_v44  ;;  %v1998_v44 = vld [vmem:[#allocation2 + $0x1e0] ss:$16 sps:$4 sm:$0xff]  }
 0x110   :  { %v2004_v31 = vld [vmem:[%s2387_s9 + $0x40] sm:$0xff]  }
 0x111   :  { %1094 = vmatpush1.bf16.msra.mxu0 %v1914_v45  ;;  %1135 = vmatpush1.bf16.msra.mxu1 %v1917_v46  ;;  %v2001_v45 = vld [vmem:[#allocation2 + $0x1e8] ss:$16 sps:$4 sm:$0xff]   ;;  %v153_v46 = vmax.f32 %v147_v41, 0.0 }
 0x112   :  { %1095 = vmatprep.subr.bf16.mxu0 %v1922_v47  ;;  %1136 = vmatprep.subr.bf16.mxu1 %v1925_v48  ;;  %v2005_v47 = vld [vmem:[%s2387_s9 + $0xc0] sm:$0xff]  }
 0x113   :  { %v237_v22 = vpack.c.bf16 %v153_v46, %v153_v46  ;;  %v2006_v48 = vld [vmem:[%s2387_s9] sm:$0xff]  }
 0x115   :  { %1096 = vmatpush1.bf16.msra.mxu0 %v1920_v49  ;;  %1137 = vmatpush1.bf16.msra.mxu1 %v1923_v50  ;;  %v2007_v49 = vld [vmem:[%s2387_s9 + $0x80] sm:$0xff]   ;;  %v2008_v50 = vld [vmem:[%s2387_s9 + $0x48] sm:$0xff]  }
 0x116   :  { %1097 = vmatprep.subr.bf16.mxu0 %v1928_v51  ;;  %1138 = vmatprep.subr.bf16.mxu1 %v1931_v52  ;;  %v2009_v51 = vld [vmem:[%s2387_s9 + $0xc8] sm:$0xff]  }
 0x117   :  { %v2010_v52 = vld [vmem:[%s2387_s9 + $0x8] sm:$0xff]  }
 0x119   :  { %1098 = vmatpush1.bf16.msra.mxu0 %v1926_v53  ;;  %1139 = vmatpush1.bf16.msra.mxu1 %v1929_v54  ;;  %v2011_v53 = vld [vmem:[%s2387_s9 + $0x88] sm:$0xff]   ;;  %v2012_v54 = vld [vmem:[%s2387_s9 + $0x50] sm:$0xff]  }
 0x11a   :  { %1099 = vmatprep.subr.bf16.mxu0 %v1934_v55  ;;  %1140 = vmatprep.subr.bf16.mxu1 %v1937_v56  ;;  %v2013_v55 = vld [vmem:[%s2387_s9 + $0xd0] sm:$0xff]  }
 0x11b   :  { %v2014_v56 = vld [vmem:[%s2387_s9 + $0x10] sm:$0xff]  }
 0x11d   :  { %1100 = vmatpush1.bf16.msra.mxu0 %v1932_v57  ;;  %1141 = vmatpush1.bf16.msra.mxu1 %v1935_v58  ;;  %v2015_v57 = vld [vmem:[%s2387_s9 + $0x90] sm:$0xff]   ;;  %v2016_v58 = vld [vmem:[%s2387_s9 + $0x58] sm:$0xff]  }
 0x11e   :  { %1101 = vmatprep.subr.bf16.mxu0 %v1940_v59  ;;  %1142 = vmatprep.subr.bf16.mxu1 %v1943_v60  ;;  %v2017_v59 = vld [vmem:[%s2387_s9 + $0xd8] sm:$0xff]  }
 0x11f   :  { %v2018_v60 = vld [vmem:[%s2387_s9 + $0x18] sm:$0xff]  }
 0x121   :  { %1102 = vmatpush1.bf16.msra.mxu0 %v1938_v61  ;;  %1143 = vmatpush1.bf16.msra.mxu1 %v1941_v62  ;;  %v2019_v61 = vld [vmem:[%s2387_s9 + $0x98] sm:$0xff]   ;;  %v2020_v62 = vld [vmem:[%s2387_s9 + $0x60] sm:$0xff]  }
 0x122   :  { %1103 = vmatprep.subr.bf16.mxu0 %v1946_v63  ;;  %1144 = vmatprep.subr.bf16.mxu1 %v1949_v0  ;;  %v2021_v63 = vld [vmem:[%s2387_s9 + $0xe0] sm:$0xff]  }
 0x123   :  { %v2022_v0 = vld [vmem:[%s2387_s9 + $0x20] sm:$0xff]  }
 0x125   :  { %1104 = vmatpush1.bf16.msra.mxu0 %v1944_v1  ;;  %1145 = vmatpush1.bf16.msra.mxu1 %v1947_v2  ;;  %v2023_v1 = vld [vmem:[%s2387_s9 + $0xa0] sm:$0xff]   ;;  %v2024_v2 = vld [vmem:[%s2387_s9 + $0x68] sm:$0xff]  }
 0x126   :  { %1105 = vmatprep.subr.bf16.mxu0 %v1952_v3  ;;  %1146 = vmatprep.subr.bf16.mxu1 %v1955_v4  ;;  %v2025_v3 = vld [vmem:[%s2387_s9 + $0xe8] sm:$0xff]  }
 0x127   :  { %v2026_v4 = vld [vmem:[%s2387_s9 + $0x28] sm:$0xff]  }
 0x129   :  { %1106 = vmatpush1.bf16.msra.mxu0 %v1950_v5  ;;  %1147 = vmatpush1.bf16.msra.mxu1 %v1953_v6  ;;  %v2027_v5 = vld [vmem:[%s2387_s9 + $0xa8] sm:$0xff]   ;;  %v2028_v6 = vld [vmem:[%s2387_s9 + $0x70] sm:$0xff]  }
 0x12a   :  { %1107 = vmatprep.subr.bf16.mxu0 %v1958_v7  ;;  %1148 = vmatprep.subr.bf16.mxu1 %v1961_v8  ;;  %v2029_v7 = vld [vmem:[%s2387_s9 + $0xf0] sm:$0xff]  }
 0x12b   :  { %v2030_v8 = vld [vmem:[%s2387_s9 + $0x30] sm:$0xff]  }
 0x12d   :  { %1108 = vmatpush1.bf16.msra.mxu0 %v1956_v9  ;;  %1149 = vmatpush1.bf16.msra.mxu1 %v1959_v10  ;;  %v2031_v9 = vld [vmem:[%s2387_s9 + $0xb0] sm:$0xff]   ;;  %v2032_v10 = vld [vmem:[%s2387_s9 + $0x78] sm:$0xff]  }
 0x12e   :  { %1109 = vmatprep.subr.bf16.mxu0 %v1964_v11  ;;  %1150 = vmatprep.subr.bf16.mxu1 %v1967_v12  ;;  %v2033_v11 = vld [vmem:[%s2387_s9 + $0xf8] sm:$0xff]  }
 0x12f   :  { %v2034_v12 = vld [vmem:[%s2387_s9 + $0x38] sm:$0xff]  }
 0x131   :  { %1110 = vmatpush1.bf16.msra.mxu0 %v1962_v13  ;;  %1151 = vmatpush1.bf16.msra.mxu1 %v1965_v14  ;;  %v2035_v13 = vld [vmem:[%s2387_s9 + $0xb8] sm:$0xff]  }
 0x132   :  { %1111 = vmatprep.subr.bf16.mxu0 %v1970_v15  ;;  %1152 = vmatprep.subr.bf16.mxu1 %v1973_v18 }
 0x135   :  { %1112 = vmatpush1.bf16.msra.mxu0 %v1968_v20  ;;  %1153 = vmatpush1.bf16.msra.mxu1 %v1971_v21 }
 0x136   :  { %1113 = vmatprep.subr.bf16.mxu0 %v1976_v23  ;;  %1154 = vmatprep.subr.bf16.mxu1 %v1979_v24 }
 0x139   :  { %1114 = vmatpush1.bf16.msra.mxu0 %v1974_v25  ;;  %1155 = vmatpush1.bf16.msra.mxu1 %v1977_v26  ;;  %v1185_v26 = vsub.s32 2, %v2232_v16 }
 0x13a   :  { %1115 = vmatprep.subr.bf16.mxu0 %v1982_v27  ;;  %1156 = vmatprep.subr.bf16.mxu1 %v1985_v28  ;;  %v1173_v27 = vld [vmem:[%s2386_s8] sm:$0xf]  ;;  %v1189_v28 = vsub.s32 3, %v2232_v16 }
 0x13d   :  { %1116 = vmatpush1.bf16.msra.mxu0 %v1980_v29  ;;  %1157 = vmatpush1.bf16.msra.mxu1 %v1983_v30  ;;  %v1178_v29 = vrot.slane %v1173_v27, %v2235_v17  ;;  %v1186_v30 = vrot.slane %v1173_v27, %v1185_v26 }
 0x13e   :  { %1117 = vmatprep.subr.bf16.mxu0 %v1988_v32  ;;  %1158 = vmatprep.subr.bf16.mxu1 %v1991_v33 }
 0x141   :  { %1118 = vmatpush1.bf16.msra.mxu0 %v1986_v34  ;;  %1159 = vmatpush1.bf16.msra.mxu1 %v1989_v35  ;;  %v1182_v34 = vrot.slane %v1173_v27, %v2241_v19  ;;  %v1190_v35 = vrot.slane %v1173_v27, %v1189_v28 }
 0x142   :  { %1119 = vmatprep.subr.bf16.mxu0 %v1994_v37  ;;  %1160 = vmatprep.subr.bf16.mxu1 %v1997_v38 }
 0x145   :  { %1120 = vmatpush1.bf16.msra.mxu0 %v1992_v39  ;;  %1161 = vmatpush1.bf16.msra.mxu1 %v1995_v40 }
 0x146   :  { %1121 = vmatprep.subr.bf16.mxu0 %v2000_v42  ;;  %1162 = vmatprep.subr.bf16.mxu1 %v2003_v43 }
 0x149   :  { %1122 = vmatpush1.bf16.msra.mxu0 %v1998_v44  ;;  %1163 = vmatpush1.bf16.msra.mxu1 %v2001_v45 }
 0x14a   :  { %1750 = vmatprep.subr.bf16.mxu0 %v2004_v31  ;;  %1772 = vmatprep.subr.bf16.mxu1 %v2005_v47 }
 0x14c   :  { %1124 = vmatmul.mubr.bf16.vlgmr.msra.gmra.mrb[8].mxu0 %v237_v22  ;;  %1165 = vmatmul.mubr.bf16.vlgmr.msra.gmra.mrb[8].mxu1 %v237_v22 }
 0x14d   :  { %1751 = vmatpush3.bf16.msra.mxu0 %v2006_v48  ;;  %1773 = vmatpush3.bf16.msra.mxu1 %v2007_v49 }
 0x14e   :  { %1752 = vmatprep.subr.bf16.mxu0 %v2008_v50  ;;  %1774 = vmatprep.subr.bf16.mxu1 %v2009_v51 }
 0x151   :  { %1753 = vmatpush3.bf16.msra.mxu0 %v2010_v52  ;;  %1775 = vmatpush3.bf16.msra.mxu1 %v2011_v53 }
 0x152   :  { %1754 = vmatprep.subr.bf16.mxu0 %v2012_v54  ;;  %1776 = vmatprep.subr.bf16.mxu1 %v2013_v55  ;;  %v1717_v55 = vld [vmem:[%s2388_s10] ss:$0 sm:$0xff]  ;;  %s2117_s10 = smov [#allocation7]  }
 0x153   :  { %s1569_s12 = sshll.u32 %s2117_s10, 4  ;;  %s1570_s12 = int_to_ptr.vmem [resolvable:$true] %s1569_s12 }
 0x154   :  { %s2084_s13 = scalar_lea.vmem %s1570_s12, 128  ;;  %p2089_p3 = scmp.lt.s32.totalorder %s1570_s12, %s1570_s12 }
 0x155   :  { %1755 = vmatpush3.bf16.msra.mxu0 %v2014_v56  ;;  %1777 = vmatpush3.bf16.msra.mxu1 %v2015_v57  ;;  %p2085_p2 = scmp.ne.s32.totalorder %s1570_s12, %s2084_s13  ;;  %p2090_p4 = scmp.lt.s32.totalorder %s2084_s13, %s2084_s13 }
 0x156   :  { %1756 = vmatprep.subr.bf16.mxu0 %v2016_v58  ;;  %1778 = vmatprep.subr.bf16.mxu1 %v2017_v59 }
 0x157   :  { %p2091_p5 = por %p2090_p4, %p2089_p3 }
 0x159   :  { %1757 = vmatpush3.bf16.msra.mxu0 %v2018_v60  ;;  %1779 = vmatpush3.bf16.msra.mxu1 %v2019_v61  ;;  %p2092_p6 = pnand %p2091_p5, %p2085_p2 }
 0x15a   :  { %1758 = vmatprep.subr.bf16.mxu0 %v2020_v62  ;;  %1780 = vmatprep.subr.bf16.mxu1 %v2021_v63 }
 0x15d   :  { %1759 = vmatpush3.bf16.msra.mxu0 %v2022_v0  ;;  %1781 = vmatpush3.bf16.msra.mxu1 %v2023_v1 }
 0x15e   :  { %1760 = vmatprep.subr.bf16.mxu0 %v2024_v2  ;;  %1782 = vmatprep.subr.bf16.mxu1 %v2025_v3 }
 0x161   :  { %1761 = vmatpush3.bf16.msra.mxu0 %v2026_v4  ;;  %1783 = vmatpush3.bf16.msra.mxu1 %v2027_v5 }
 0x162   :  { %1762 = vmatprep.subr.bf16.mxu0 %v2028_v6  ;;  %1784 = vmatprep.subr.bf16.mxu1 %v2029_v7 }
 0x165   :  { %1763 = vmatpush3.bf16.msra.mxu0 %v2030_v8  ;;  %1785 = vmatpush3.bf16.msra.mxu1 %v2031_v9 }
 0x166   :  { %1764 = vmatprep.subr.bf16.mxu0 %v2032_v10  ;;  %1786 = vmatprep.subr.bf16.mxu1 %v2033_v11 }
 0x169   :  { %1765 = vmatpush3.bf16.msra.mxu0 %v2034_v12  ;;  %1787 = vmatpush3.bf16.msra.mxu1 %v2035_v13 }
 0x1df   :  { %v723_v14 = vpop.f32.mrb[4].mxu0  ;;  %v764_v15 = vpop.f32.mrb[4].mxu1 }
 0x1e0   :  { %v725_v18 = vpop.f32.mrb[5].mxu0  ;;  %v766_v20 = vpop.f32.mrb[5].mxu1 }
 0x1e1   :  { %v727_v21 = vpop.f32.mrb[6].mxu0  ;;  %v768_v23 = vpop.f32.mrb[6].mxu1 }
 0x1e2   :  { %v728_v24 = vpop.f32.mrb[7].mxu0  ;;  %v769_v25 = vpop.f32.mrb[7].mxu1 }
 0x21f   :  { %v1125_v32 = vpop.f32.mrb[8].mxu0  ;;  %v1166_v33 = vpop.f32.mrb[8].mxu1 }
 0x220   :  { %v1126_v36 = vadd.f32 %v1125_v32, %v723_v14  ;;  %v1167_v37 = vadd.f32 %v1166_v33, %v764_v15  ;;  %v1127_v38 = vpop.f32.mrb[9].mxu0  ;;  %v1168_v39 = vpop.f32.mrb[9].mxu1 }
 0x221   :  { %v1128_v40 = vadd.f32 %v1127_v38, %v725_v18  ;;  %v1169_v41 = vadd.f32 %v1168_v39, %v766_v20  ;;  %v1129_v42 = vpop.f32.mrb[10].mxu0  ;;  %v1170_v43 = vpop.f32.mrb[10].mxu1 }
 0x222   :  { %v1195_v44 = vadd.f32 %v1178_v29, %v1126_v36  ;;  %v1197_v45 = vadd.f32 %v1186_v30, %v1167_v37  ;;  %v1130_v46 = vpop.f32.mrb[11].mxu0  ;;  %v1171_v16 = vpop.f32.mrb[11].mxu1 }
 0x223   :  { %v1196_v22 = vadd.f32 %v1182_v34, %v1128_v40  ;;  %v1198_v17 = vadd.f32 %v1190_v35, %v1169_v41 }
 0x224   :  { %v1199_v31 = vmax.f32 %v1195_v44, 0.0  ;;  %v1201_v47 = vmax.f32 %v1197_v45, 0.0 }
 0x225   :  { %v1200_v48 = vmax.f32 %v1196_v22, 0.0  ;;  %v1202_v49 = vmax.f32 %v1198_v17, 0.0 }
 0x226   :  { %v1203_v51 = vpack.c.bf16 %v1199_v31, %v1199_v31  ;;  %v1205_v52 = vpack.c.bf16 %v1201_v47, %v1201_v47 }
 0x227   :  { %v1204_v19 = vpack.c.bf16 %v1200_v48, %v1200_v48  ;;  %v1206_v50 = vpack.c.bf16 %v1202_v49, %v1202_v49 }
 0x229   :  { %1502 = vmatprep.mubr.bf16.mxu0 %v1204_v19  ;;  %1542 = vmatprep.mubr.bf16.mxu1 %v1206_v50 }
 0x22a   :  { %1503 = vmatmul.mubr.bf16.vlgmr.msra.gmra.mrb[12].mxu0 %v1203_v51  ;;  %1543 = vmatmul.mubr.bf16.vlgmr.msra.gmra.mrb[12].mxu1 %v1205_v52 }
 0x2fd   :  { %v1766_v53 = vpop.f32.mrb[12].mxu0  ;;  %v1788_v54 = vpop.f32.mrb[12].mxu1 }
 0x2fe   :  { %v1767_v56 = vpop.f32.mrb[13].mxu0  ;;  %v1789_v57 = vpop.f32.mrb[13].mxu1 }
 0x2ff   :  { %v1768_v58 = vadd.f32 %v1767_v56, %v1766_v53  ;;  %v1790_v59 = vadd.f32 %v1789_v57, %v1788_v54  ;;  %v1769_v60 = vpop.f32.mrb[14].mxu0  ;;  %v1791_v61 = vpop.f32.mrb[14].mxu1 }
 0x300   :  { %v1770_v62 = vpop.f32.mrb[15].mxu0  ;;  %v1792_v63 = vpop.f32.mrb[15].mxu1 }
 0x301   :  { %v1505_v0 = vadd.f32 %v1768_v58, %v1717_v55 }
 0x303   :  { %v1545_v1 = vadd.f32 %v1790_v59, %v1505_v0 }
 0x305   :  { %v1551_v2 = vsel %vm1550_vm1, %v1545_v1, -inf }
 0x306   :  { %1552 = vmax.xlane.f32.xlu0 %v1551_v2 }
 0x393   :  { %v1553_v3 = vpop.xlane.xlu0 %1552 }
 0x394   :  { %v1554_v4 = vsub.f32 %v1545_v1, %v1553_v3 }
 0x396   :  { %v1555_v5 = vmul.f32 1.442695, %v1554_v4 }
 0x398   :  { %2036 = vpow2.f32 %v1555_v5 }
 0x3a2   :  { %v2037_v6 = vpop.eup %2036 }
 0x3a3   :  { %v1557_v7 = vsel %vm1550_vm1, %v2037_v6, 0.0 }
 0x3a4   :  { %1558 = vadd.xlane.f32.xlu0 %v1557_v7 }
 0x431   :  { %v1559_v8 = vpop.xlane.xlu0 %1558 }
 0x432   :  { %2038 = vrcp.f32 %v1559_v8 }
 0x43c   :  { %v2039_v9 = vpop.eup %2038 }
 0x43d   :  { %v1561_v10 = vmul.f32 %v2039_v9, %v2037_v6 }
 0x43f   :  { %1562 = vst.msk [vmem:[#allocation7] sm:$0xff] %vm1550_vm1, %v1561_v10 }
 0x440   :  { %2095 = shalt.err (!%p2092_p6)
}
 0x441   :  { %s2096_s16 = scalar_lea.hbm %s2389_s11, 128 }
 0x442   :  { %p2097_p7 = scmp.ne.s32.totalorder %s2389_s11, %s2096_s16  ;;  %p2100_p8 = scmp.lt.u32.totalorder %s2096_s16, %s2389_s11 }
 0x444   :  { %p2102_p9 = pnand %p2100_p8, %p2097_p7 }
 0x446   :  { %2105 = shalt.err (!%p2102_p9)
}
 0x447   :  { %1572 = dma.vmem_to_hbm [thread:$0]  %s1570_s12, 128, %s2389_s11, [#allocation4]  }
 0x448   :  { %2110 = dma.done.wait [#allocation4], 128  }
 0x449   :  { %2111 = vsyncadd [#allocation4], 4294967168 }
 0x44a   :  { %1576 = vsyncpa [#allocation3], 1 }
 0x44b   :  { %1577 = vsyncpa [#allocation6], 1 }
 0x44c   :  { %1578 = vsyncpa [#allocation4], 1 }

</bundles_post_ra>
